<compile_context>
chip_gen: v7x
topology: tpu7x:2x2x1
jax: 0.10.0
libtpu: 0.0.40
codegen_flags: <defaults>
</compile_context>

<pallas_src>
import functools
import math

import numpy as np

import jax
import jax.numpy as jnp
from jax.experimental import pallas as pl
from jax.experimental.pallas import tpu as pltpu


# ----------------------------- kernel ---------------------------------------
def _rope_kernel(tab_ref, perm_ref, x_ref, o_ref, *, mxu_precision):
    """One grid step = one (seq-tile, batch-block).

    tab_ref : (2, T_S, Df) f32   [0]=cos(emb), [1]=sin(emb); batch-invariant.
    perm_ref: (Df, Df)           signed permutation encoding rotate_half.
    x_ref   : (Bb, T_S, Df)
    o_ref   : (Bb, T_S, Df)
    """
    cos_t = tab_ref[0]                                    # (T_S, Df) f32
    sin_t = tab_ref[1]
    p = perm_ref[...]
    for b in range(x_ref.shape[0]):                       # small static unroll
        xb = x_ref[b]                                      # (T_S, Df)
        # rotate_half as a signed permutation: each output is +/- one input,
        # so the matmul is exact (f32@HIGHEST, or bf16@DEFAULT for bf16 x).
        rh = jnp.dot(xb.astype(p.dtype), p,
                     preferred_element_type=jnp.float32,
                     precision=mxu_precision)
        xf = xb.astype(jnp.float32)                        # f32 VPU (v5e-safe)
        o_ref[b] = (xf * cos_t + rh * sin_t).astype(o_ref.dtype)


# ------------------------ cached host-side tables ---------------------------
@functools.lru_cache(maxsize=32)
def _rope_tables(seq_len, dim, base):
    """(2, S, D) f32 stack of [cos(emb), sin(emb)], identical math to torch."""
    inv_freq = 1.0 / (base ** (jnp.arange(0, dim, 2, dtype=jnp.float32) / dim))
    t = jnp.arange(seq_len, dtype=jnp.float32)
    freqs = t[:, None] * inv_freq[None, :]                          # (S, D/2)
    emb = jnp.concatenate([jnp.sin(freqs), jnp.cos(freqs)], axis=-1)  # (S, D)
    tab = jnp.stack([jnp.cos(emb), jnp.sin(emb)], axis=0)   # double-trig quirk
    return jax.block_until_ready(tab)


@functools.lru_cache(maxsize=32)
def _rotate_half_perm(dim, fold):
    """Signed permutation P with (row @ P) == rotate_half(row), kron-folded."""
    h = dim // 2
    p = np.zeros((dim, dim), np.float32)
    k = np.arange(h)
    p[2 * k + 1, k] = -1.0          # rh[k]      = -x[2k+1]
    p[2 * k, k + h] = 1.0           # rh[k+D/2]  =  x[2k]
    if fold > 1:
        p = np.kron(np.eye(fold, dtype=np.float32), p)
    return p


# ------------------------------ tiling helpers -------------------------------
def _choose_seq_tile(sf, max_rows):
    """Return (tile, padded_len); never forces an oversized whole-seq tile."""
    if sf <= max_rows:
        return sf, sf                       # block dim == full dim (always ok)
    t = (max_rows // 8) * 8
    while t >= 8:
        if sf % t == 0:
            return t, sf
        t -= 8
    t = (max_rows // 8) * 8                 # no divisor -> pad up to a multiple
    return t, ((sf + t - 1) // t) * t


def _choose_batch_block(b, t_s, df, esize, target_bytes):
    bb = 1
    for cand in range(1, min(b, 8) + 1):
        if b % cand == 0 and cand * t_s * df * esize <= target_bytes:
            bb = cand
    return bb


# -------------------------------- wrapper ------------------------------------
def rotary_positional_embedding(x, base=10000.0):
    """Pallas RoPE. x: (B, S, D), D even."""
    B, S, D = x.shape
    assert D % 2 == 0, "rotary dim must be even"

    tab = _rope_tables(S, D, float(base))                 # (2, S, D) f32

    # Lane-dense folding: merge r consecutive positions into the lane dim so
    # stores are unmasked 128-lane vst's. Only fold when D divides 128 so the
    # rotate_half permutation never grows past 128x128 (no kron inflation).
    r = 128 // D if (D < 128 and 128 % D == 0 and S % (128 // D) == 0) else 1
    Sf, Df = S // r, D * r
    perm = _rotate_half_perm(D, r)                        # (Df, Df) np.f32

    xf = x.reshape(B, Sf, Df)                             # free contiguous view
    tabf = tab.reshape(2, Sf, Df)

    # Block sizing: ~4 MiB of x per step; double-buffered working set
    # (2*(x+out) + tables + perm) stays < ~20 MiB -> safe on v7x's 64 MiB VMEM.
    esize = x.dtype.itemsize
    target_bytes = 4 << 20
    max_rows = max(8, min(1024, (target_bytes // (Df * esize)) // 8 * 8))
    T_S, Sp = _choose_seq_tile(Sf, max_rows)
    if Sp != Sf:                                          # padded fallback
        xf = jnp.pad(xf, ((0, 0), (0, Sp - Sf), (0, 0)))
        tabf = jnp.pad(tabf, ((0, 0), (0, Sp - Sf), (0, 0)))

    Bb = _choose_batch_block(B, T_S, Df, esize, target_bytes)
    if Sp // T_S == 1 and Bb == B and B > 1:
        # keep >= 2 grid steps so the v7x megacore has something to split
        Bb = next(c for c in range(B // 2, 0, -1) if B % c == 0)
    n_s, n_b = Sp // T_S, B // Bb

    if x.dtype == jnp.bfloat16:
        perm_dev = jnp.asarray(perm, dtype=jnp.bfloat16)   # exact in bf16
        prec = jax.lax.Precision.DEFAULT                   # 1 pass, exact vs +/-1/0
    else:
        perm_dev = jnp.asarray(perm)
        prec = jax.lax.Precision.HIGHEST                   # exact vs f32 reference

    kernel = functools.partial(_rope_kernel, mxu_precision=prec)

    out = pl.pallas_call(
        kernel,
        out_shape=jax.ShapeDtypeStruct((B, Sp, Df), x.dtype),
        grid_spec=pltpu.PrefetchScalarGridSpec(
            num_scalar_prefetch=0,
            # batch is the fastest grid axis -> tables/perm keep the same block
            # index across it and are not re-DMA'd per batch block.
            grid=(n_s, n_b),
            in_specs=[
                pl.BlockSpec((2, T_S, Df), lambda s, b: (0, s, 0)),    # cos/sin
                pl.BlockSpec((Df, Df), lambda s, b: (0, 0)),           # perm
                pl.BlockSpec((Bb, T_S, Df), lambda s, b: (b, s, 0)),   # x
            ],
            out_specs=pl.BlockSpec((Bb, T_S, Df), lambda s, b: (b, s, 0)),
        ),
        compiler_params=pltpu.CompilerParams(
            dimension_semantics=("parallel", "parallel"),
            vmem_limit_bytes=40 * 1024 * 1024),
    )(tabf, perm_dev, xf)

    if Sp != Sf:
        out = out[:, :Sf]
    return out.reshape(B, S, D)


# ------------------------------ reference ------------------------------------
def rotary_reference(x, base=10000.0):
    """Pure-JAX reference mirroring the PyTorch module line by line."""
    B, S, D = x.shape
    inv_freq = 1.0 / (base ** (jnp.arange(0, D, 2, dtype=jnp.float32) / D))
    t = jnp.arange(S, dtype=jnp.float32)
    freqs = jnp.einsum("i,j->ij", t, inv_freq)
    emb = jnp.concatenate([jnp.sin(freqs), jnp.cos(freqs)], axis=-1)[None, :, :]
    x1, x2 = x[..., ::2], x[..., 1::2]
    rh = jnp.concatenate([-x2, x1], axis=-1)
    return x * jnp.cos(emb) + rh * jnp.sin(emb)


if __name__ == "__main__":
    B, S, D = 2, 8, 32
    key = jax.random.PRNGKey(0)
    x = jax.random.normal(key, (B, S, D), dtype=jnp.float32)

    out = jax.block_until_ready(rotary_positional_embedding(x))

    ref = rotary_reference(x)
    assert out.shape == (B, S, D)
    assert jnp.allclose(out, ref, atol=1e-5, rtol=1e-5), (
        f"max abs err = {jnp.max(jnp.abs(out - ref))}")
    print("KERNEL_OK")
</pallas_src>

<mosaic_0001>
module attributes {stable_mosaic.version = 11 : i64} {
  func.func @_rope_kernel(%arg0: i32, %arg1: i32, %arg2: memref<2x2x128xf32, #tpu.memory_space<vmem>>, %arg3: memref<128x128xf32, #tpu.memory_space<vmem>>, %arg4: memref<1x2x128xf32, #tpu.memory_space<vmem>>, %arg5: memref<1x2x128xf32, #tpu.memory_space<vmem>>) attributes {dimension_semantics = [#tpu.dimension_semantics<parallel>, #tpu.dimension_semantics<parallel>], iteration_bounds = array<i64: 1, 2>, scalar_prefetch = 0 : i64, scratch_operands = 0 : i64, tpu.core_type = #tpu.core_type<tc>, window_params = [{transform_indices = @transform_0, window_bounds = array<i64: 2, 2, 128>}, {pipeline_mode = #tpu.pipeline_mode<synchronous>, transform_indices = @transform_1, window_bounds = array<i64: 128, 128>}, {transform_indices = @transform_2, window_bounds = array<i64: 1, 2, 128>}, {transform_indices = @transform_3, window_bounds = array<i64: 1, 2, 128>}]} {
    %c0 = arith.constant 0 : index
    %c0_0 = arith.constant 0 : index
    %c0_1 = arith.constant 0 : index
    %0 = vector.load %arg2[%c0, %c0_0, %c0_1] : memref<2x2x128xf32, #tpu.memory_space<vmem>>, vector<1x2x128xf32>
    %1 = vector.shape_cast %0 : vector<1x2x128xf32> to vector<2x128xf32>
    %c1 = arith.constant 1 : index
    %c0_2 = arith.constant 0 : index
    %c0_3 = arith.constant 0 : index
    %2 = vector.load %arg2[%c1, %c0_2, %c0_3] : memref<2x2x128xf32, #tpu.memory_space<vmem>>, vector<1x2x128xf32>
    %3 = vector.shape_cast %2 : vector<1x2x128xf32> to vector<2x128xf32>
    %c0_4 = arith.constant 0 : index
    %c0_5 = arith.constant 0 : index
    %4 = vector.load %arg3[%c0_4, %c0_5] : memref<128x128xf32, #tpu.memory_space<vmem>>, vector<128x128xf32>
    %c0_6 = arith.constant 0 : index
    %c0_7 = arith.constant 0 : index
    %c0_8 = arith.constant 0 : index
    %5 = vector.load %arg4[%c0_6, %c0_7, %c0_8] : memref<1x2x128xf32, #tpu.memory_space<vmem>>, vector<1x2x128xf32>
    %6 = vector.shape_cast %5 : vector<1x2x128xf32> to vector<2x128xf32>
    %cst = arith.constant dense<0.000000e+00> : vector<2x128xf32>
    %7 = tpu.matmul %6, %4, %cst {dimension_numbers = #tpu.dot_dimension_numbers<[1], [0], [0], [1], [0, 0, 1, 1], [], []>, precision = #tpu.contract_precision<fp32>} : vector<2x128xf32>, vector<128x128xf32>, vector<2x128xf32> -> vector<2x128xf32>
    %8 = arith.mulf %6, %1 : vector<2x128xf32>
    %9 = arith.mulf %7, %3 : vector<2x128xf32>
    %10 = arith.addf %8, %9 : vector<2x128xf32>
    %c0_9 = arith.constant 0 : index
    %c0_10 = arith.constant 0 : index
    %c0_11 = arith.constant 0 : index
    %11 = vector.load %arg5[%c0_9, %c0_10, %c0_11] : memref<1x2x128xf32, #tpu.memory_space<vmem>>, vector<1x2x128xf32>
    %12 = vector.shape_cast %11 : vector<1x2x128xf32> to vector<2x128xf32>
    %13 = vector.shape_cast %10 : vector<2x128xf32> to vector<1x2x128xf32>
    tpu.vector_store %arg5[%c0_9, %c0_10, %c0_11], %13 {strides = array<i32>} : memref<1x2x128xf32, #tpu.memory_space<vmem>>, vector<1x2x128xf32>,
    return
  }
  func.func @transform_0(%arg0: i32, %arg1: i32) -> (i32, i32, i32) {
    %c0_i32 = arith.constant 0 : i32
    %c0_i32_0 = arith.constant 0 : i32
    %c0_i32_1 = arith.constant 0 : i32
    return %c0_i32, %arg0, %c0_i32_0 : i32, i32, i32
  }
  func.func @transform_1(%arg0: i32, %arg1: i32) -> (i32, i32) {
    %c0_i32 = arith.constant 0 : i32
    %c0_i32_0 = arith.constant 0 : i32
    %c0_i32_1 = arith.constant 0 : i32
    return %c0_i32, %c0_i32_0 : i32, i32
  }
  func.func @transform_2(%arg0: i32, %arg1: i32) -> (i32, i32, i32) {
    %c0_i32 = arith.constant 0 : i32
    %c0_i32_0 = arith.constant 0 : i32
    return %arg1, %arg0, %c0_i32 : i32, i32, i32
  }
  func.func @transform_3(%arg0: i32, %arg1: i32) -> (i32, i32, i32) {
    %c0_i32 = arith.constant 0 : i32
    %c0_i32_0 = arith.constant 0 : i32
    return %arg1, %arg0, %c0_i32 : i32, i32, i32
  }
}

</mosaic_0001>

<bundles_post_ra>
// kernel: tpu_custom_call.1
= control target key start
LH: loop header
LB: loop body
LE: loop exit
PB: predicated region body
PF: predicated region fallthrough
CT: control target
= control target key end

     0   :  { %8 = vsyncpa [#allocation3], 0  ;;  %s2187_s0 = inlined_call_operand.hbm [shape: f32[2,2,128], index: 0, kind: input, shape index: {}]   ;;  %s2188_s1 = inlined_call_operand.hbm [shape: f32[128,128], index: 1, kind: input, shape index: {}]   ;;  %s2189_s2 = inlined_call_operand.vmem [shape: f32[2,2,128], index: 2, kind: input, shape index: {}]   ;;  %s2190_s3 = inlined_call_operand.hbm [shape: f32[2,2,128], index: 3, kind: output, shape index: {}]  }
   0x1   :  { %9 = vsyncpa [#allocation6], 0 }
   0x2   :  { %10 = vsyncpa [#allocation4], 0 }
   0x3   :  { %12 = vsyncpa [#allocation4 + $0x1], 0  ;;  %s1740_s12 = smov 0   ;;  %s1742_s13 = smov 0  }
   0x4   :  { %s1744_s14 = smov 0   ;;  %s1746_s15 = smov 0  }
   0x5   :  { %s1748_s16 = smov 0   ;;  %s1750_s17 = smov 0  }
   0x6 LB: > { %s1003_s18 = sadd.s32 4294967295, %s1708_s17   ;;  %s1004_s19 = sadd.s32 4294967294, %s1708_s17   ;;  %s1708_s17 = sphi %s1750_s17, %s18_s17   ;;  %s1704_s16 = sphi %s1748_s16, %s2208_s16   ;;  %s1700_s15 = sphi %s1746_s15, %s2207_s15   ;;  %s1696_s14 = sphi %s1744_s14, %s2206_s14   ;;  %s1692_s13 = sphi %s1742_s13, %s2205_s13   ;;  %s1688_s12 = sphi %s1740_s12, %s2204_s12  }
   0x7   : > { %s27_s20 = sadd.s32 1, %s1704_s16  ;;  %s114_s21 = sadd.s32 1, %s1696_s14 }
   0x8   : > { %p28_p0 = scmp.ge.s32.totalorder %s27_s20, 2  ;;  %p124_p1 = scmp.ne.s32.totalorder %s1696_s14, %s1692_s13 }
   0x9   : > { %p125_p2 = scmp.eq.s32.totalorder %s1003_s18, 1  ;;  %p130_p3 = scmp.ne.s32.totalorder %s1692_s13, %s1688_s12 }
   0xa   : > { %s2210_s20 = smov (%p28_p0, %s27_s20), 0  ;;  %p131_p5 = scmp.eq.s32.totalorder %s1004_s19, 1 }
   0xb   : > { %p1780_p4 = por %p125_p2, %p124_p1  ;;  %s109_s23 = ssub.s32 %s1704_s16, %s2210_s20 }
   0xc   : > { %p1005_p6 = scmp.ge.s32.totalorder %s1708_s17, 1  ;;  %p112_p7 = scmp.eq.s32.totalorder %s109_s23, 0 }
   0xd   : > { %s2195_s22 = scalar_select %p1780_p4, 1, 0 }
   0xe   : > { %p1787_p8 = por %p131_p5, %p130_p3  ;;  %p138_p9 = scmp.lt.s32.totalorder %s1708_s17, 3 }
   0xf   : > { %s1793_s25 = scalar_select %p112_p7, %s1696_s14, %s114_s21  }
  0x10   : > { %s2196_s24 = scalar_select %p1787_p8, 1, 0 }
  0x11   : > { %p1795_p10 = pnand %p1005_p6, %p138_p9  ;;  %p1799_p11 = scmp.eq.s32.totalorder %s1003_s18, 0 }
  0x12   : > { %s1710_s28 = smov [#allocation2]   ;;  %s1711_s4 = smov [#allocation5]  }
  0x13   : > { %s2197_s26 = scalar_select %p1795_p10, 1, 0 }
  0x14   : > { %s2198_s27 = scalar_select %p1799_p11, 1, 0 }
  0x15   : > { %p1493_p12 = pneg %p1795_p10  ;;  %s152_s29 = sshll.u32 %s1710_s28, 4  ;;  %s153_s29 = int_to_ptr.vmem [resolvable:$true] %s152_s29 }
  0x16   : > { %s165_s5 = sshll.u32 %s1711_s4, 4  ;;  %s1566_s8 = scalar_lea.hbm %s2187_s0, 64  ;;  %s1811_s5 = int_to_ptr.vmem [resolvable:$true] %s165_s5 }
  0x17   : > { %p1807_p13 = pnand %p1799_p11, %p1493_p12  ;;  %p1567_p0 = scmp.ne.s32.totalorder %s2187_s0, %s1566_s8 }
  0x18   : > { %p1573_p5 = scmp.lt.u32.totalorder %s1566_s8, %s2187_s0 }
  0x19   : > { %p1568_p1 = pneg %p1807_p13 }
  0x1b   : > { %p1569_p2 = pnand %p1568_p1, %p1567_p0 }
  0x1d   : > { %p1570_p3 = pneg %p1569_p2 }
  0x1f   : > { %p1575_p6 = pnand %p1573_p5, %p1570_p3 }
  0x21   : > { %1578 = shalt.err (!%p1575_p6)
}
  0x22   : > { %s1579_s19 = scalar_lea.vmem %s153_s29, 64  ;;  %p1587_p8 = scmp.lt.s32.totalorder %s153_s29, %s153_s29 }
  0x23   : > { %p1580_p7 = scmp.ne.s32.totalorder %s153_s29, %s1579_s19  ;;  %p1588_p4 = scmp.lt.s32.totalorder %s1579_s19, %s1579_s19 }
  0x25   : > { %p1582_p9 = pnand %p1580_p7, %p1568_p1  ;;  %p1589_p11 = por %p1588_p4, %p1587_p8 }
  0x27   : > { %p1583_p12 = pneg %p1582_p9 }
  0x29   : > { %p1590_p10 = pnand %p1589_p11, %p1583_p12 }
  0x2b   : > { %1593 = shalt.err (!%p1590_p10)
}
  0x2c   : > { %s1712_s21 = smov 32   ;;  %s1713_s23 = smov 2  }
  0x2d   : > { %1496 = dma.hbm_to_vmem [thread:$0]  (!%p1807_p13), %s2187_s0, 64, %s153_s29, [#allocation3], %s1712_s21, %s1712_s21, %s1713_s23  }
  0x2e   : > { %s1594_s8 = scalar_lea.hbm %s2188_s1, 2048 }
  0x2f   : > { %p1595_p0 = scmp.ne.s32.totalorder %s2188_s1, %s1594_s8  ;;  %p1601_p10 = scmp.lt.u32.totalorder %s1594_s8, %s2188_s1 }
  0x31   : > { %p1597_p4 = pnand %p1595_p0, %p1568_p1 }
  0x33   : > { %p1598_p8 = pneg %p1597_p4 }
  0x35   : > { %p1603_p11 = pnand %p1601_p10, %p1598_p8 }
  0x37   : > { %1606 = shalt.err (!%p1603_p11)
}
  0x38   : > { %s1607_s29 = scalar_lea.vmem %s1811_s5, 2048  ;;  %p1615_p6 = scmp.lt.s32.totalorder %s1811_s5, %s1811_s5 }
  0x39   : > { %p1608_p2 = scmp.ne.s32.totalorder %s1811_s5, %s1607_s29  ;;  %p1616_p7 = scmp.lt.s32.totalorder %s1607_s29, %s1607_s29 }
  0x3b   : > { %p1610_p3 = pnand %p1608_p2, %p1568_p1  ;;  %p1617_p9 = por %p1616_p7, %p1615_p6 }
  0x3d   : > { %p1611_p5 = pneg %p1610_p3 }
  0x3f   : > { %p1618_p12 = pnand %p1617_p9, %p1611_p5 }
  0x41   : > { %1621 = shalt.err (!%p1618_p12)
}
  0x42   : > { %s1714_s19 = smov 128   ;;  %s1715_s21 = smov 8  }
  0x43   : > { %1499 = dma.hbm_to_vmem [thread:$0]  (!%p1807_p13), %s2188_s1, 2048, %s1811_s5, [#allocation6], %s1714_s19, %s1714_s19, %s1715_s21  }
  0x44   : > { %p2200_p0 = scmp.ne.s32.totalorder %s2197_s26, 0 }
  0x45   : > { %p2201_p1 = scmp.ne.s32.totalorder (!%p2200_p0), %s2198_s27, 0 }
  0x46   : > { %191 = sbr.rel (%p2200_p0) target bundleno = 413 (0x19d), region = 32 }
  0x4d   : > { %1675 = dma.done.wait (%p2201_p1), [#allocation3], 64  }
  0x4e   : > { %1677 = vsyncadd (%p2201_p1), [#allocation3], 4294967232 }
  0x4f   : > { %1679 = dma.done.wait (%p2201_p1), [#allocation6], 2048  }
  0x50   : > { %1681 = vsyncadd (%p2201_p1), [#allocation6], 4294965248  ;;  %v1716_v0 = vmov 0.0|0.0   ;;  %vm1717_vm0 = vmmov 0   ;;  %v1718_v1 = vmov 0.0   ;;  %p221_p13 = scmp.lt.s32.totalorder %s1700_s15, 1 }
  0x51   : > { %1330 = vmatprep.subr.bf16.mxu1 %v1716_v0  ;;  %1402 = vmatprep.subr.bf16.mxu0 %v1716_v0  ;;  %v231_v2 = vld [vmem:[#allocation5] sm:$0xff]  ;;  %v232_v3 = vld [vmem:[#allocation5 + $0x8] sm:$0xff]  ;;  %v233_v4 = vld [vmem:[#allocation5 + $0x10] sm:$0xff]  ;;  %s218_s6 = sand.u32 1, %s1692_s13   ;;  %s1015_s8 = sshll.u32 %s1700_s15, 5 }
  0x52   : > { %1152 = vmatprep.mubr.msk.f32.mxu1 %vm1717_vm0, %v1718_v1  ;;  %1257 = vmatprep.mubr.msk.f32.mxu0 %vm1717_vm0, %v1718_v1  ;;  %v249_v5 = vand.u32 4294901760, %v231_v2  ;;  %v252_v6 = vand.u32 4294901760, %v232_v3  ;;  %v234_v7 = vld [vmem:[#allocation5 + $0x18] sm:$0xff]  ;;  %v255_v8 = vand.u32 4294901760, %v233_v4  ;;  %v235_v10 = vld [vmem:[#allocation5 + $0x20] sm:$0xff]  ;;  %v236_v11 = vld [vmem:[#allocation5 + $0x28] sm:$0xff]  ;;  %s2140_s29 = scalar_lea.hbm %s2190_s3, %s1015_s8 }
  0x53   : > { %v258_v9 = vand.u32 4294901760, %v234_v7  ;;  %s222_s26 = scalar_select %p221_p13, %s1700_s15, 1  ;;  %v261_v14 = vand.u32 4294901760, %v235_v10  ;;  %v264_v15 = vand.u32 4294901760, %v236_v11  ;;  %v1886_v16 = vld [vmem:[#allocation5 + $0x30] sm:$0xff]  ;;  %v1888_v17 = vld [vmem:[#allocation5 + $0x38] sm:$0xff] }
  0x54   : > { %v1877_v12 = vpack.c.bf16 %v252_v6, %v249_v5  ;;  %v267_v19 = vand.u32 4294901760, %v1886_v16  ;;  %v270_v20 = vand.u32 4294901760, %v1888_v17  ;;  %v1898_v21 = vld [vmem:[#allocation5 + $0x40] sm:$0xff]  ;;  %v1900_v22 = vld [vmem:[#allocation5 + $0x48] sm:$0xff]  ;;  %v1915_v27 = vld [vmem:[#allocation5 + $0x50] sm:$0xff]  ;;  %v1919_v29 = vsub.f32 %v231_v2, %v249_v5  ;;  %s1012_s7 = sshll.u32 %s218_s6, 1 }
  0x55   : > { %v1882_v13 = vpack.c.bf16 %v258_v9, %v255_v8  ;;  %s1013_s27 = sshll.u32 %s222_s26, 1  ;;  %v1892_v18 = vpack.c.bf16 %v264_v15, %v261_v14  ;;  %v273_v24 = vand.u32 4294901760, %v1898_v21  ;;  %v276_v25 = vand.u32 4294901760, %v1900_v22  ;;  %v1917_v28 = vld [vmem:[#allocation5 + $0x58] sm:$0xff]  ;;  %v1932_v35 = vld [vmem:[#allocation5 + $0x60] sm:$0xff]  ;;  %v1936_v36 = vld [vmem:[#allocation5 + $0x68] sm:$0xff] }
  0x56   : > { %1332 = vmatpush3.bf16.msra.mxu1 %v1877_v12  ;;  %1404 = vmatpush3.bf16.msra.mxu0 %v1877_v12  ;;  %s227_s4 = scalar_lea.vmem %s2189_s2, %s1013_s27  ;;  %v1907_v23 = vpack.c.bf16 %v270_v20, %v267_v19  ;;  %v1924_v31 = vsub.f32 %v232_v3, %v252_v6  ;;  %v279_v33 = vand.u32 4294901760, %v1915_v27  ;;  %v282_v34 = vand.u32 4294901760, %v1917_v28  ;;  %v1956_v43 = vld [vmem:[#allocation5 + $0x70] sm:$0xff]  ;;  %v1958_v44 = vld [vmem:[#allocation5 + $0x78] sm:$0xff]  ;;  %s220_s9 = scalar_lea.vmem [#allocation7], %s1012_s7 }
  0x57   : > { %1333 = vmatprep.subr.bf16.mxu1 %v1716_v0  ;;  %1405 = vmatprep.subr.bf16.mxu0 %v1716_v0  ;;  %v1911_v26 = vld [vmem:[%s227_s4] sm:$0x3]  ;;  %v1928_v32 = vpack.c.bf16 %v276_v25, %v273_v24  ;;  %v1938_v37 = vsub.f32 %v233_v4, %v255_v8  ;;  %v1940_v38 = vsub.f32 %v234_v7, %v258_v9  ;;  %v285_v39 = vand.u32 4294901760, %v1932_v35  ;;  %s908_s10 = sshll.u32 %s220_s9, 4  ;;  %s894_s19 = scalar_lea.sflag [#allocation4], %s218_s6  ;;  %s2142_s10 = int_to_ptr.vmem [resolvable:$true] %s908_s10 }
  0x58   : > { %v1922_v30 = vand.u32 4294901760, %v1911_v26  ;;  %v1953_v41 = vpack.c.bf16 %v282_v34, %v279_v33  ;;  %v288_v42 = vand.u32 4294901760, %v1936_v36  ;;  %v342_v45 = vand.u32 4294901760, %v1919_v29  ;;  %s1622_s21 = scalar_lea.vmem %s2142_s10, 32  ;;  %p2202_p8 = scmp.ne.s32.totalorder %s2195_s22, 0 }
  0x59   : > { %v349_v46 = vand.u32 4294901760, %v1924_v31  ;;  %v1964_v47 = vsub.f32 %v235_v10, %v261_v14  ;;  %v1966_v48 = vsub.f32 %v236_v11, %v264_v15  ;;  %v291_v49 = vand.u32 4294901760, %v1956_v43  ;;  %p1623_p4 = scmp.ne.s32.totalorder %s2142_s10, %s1622_s21  ;;  %s1719_s15 = smov [#allocation7]  }
  0x5a   : > { %1335 = vmatpush3.bf16.msra.mxu1 %v1882_v13  ;;  %1407 = vmatpush3.bf16.msra.mxu0 %v1882_v13  ;;  %v1945_v40 = vsub.f32 %v1911_v26, %v1922_v30  ;;  %v294_v50 = vand.u32 4294901760, %v1958_v44  ;;  %v356_v52 = vand.u32 4294901760, %v1938_v37  ;;  %v1978_v53 = vpack.c.bf16 %v288_v42, %v285_v39  ;;  %s1626_s23 = sshll.u32 %s1719_s15, 4  ;;  %s1627_s23 = int_to_ptr.vmem [resolvable:$false] %s1626_s23 }
  0x5b   : > { %1336 = vmatprep.subr.bf16.mxu1 %v1716_v0  ;;  %1408 = vmatprep.subr.bf16.mxu0 %v1716_v0  ;;  %v343_v54 = vsub.f32 %v1919_v29, %v342_v45  ;;  %v350_v55 = vsub.f32 %v1924_v31, %v349_v46  ;;  %v363_v56 = vand.u32 4294901760, %v1940_v38  ;;  %v1986_v57 = vsub.f32 %v1886_v16, %v267_v19  ;;  %p1624_p10 = pnand %p1623_p4, %p2202_p8  ;;  %s1628_s28 = scalar_lea.vmem %s1627_s23, 64 }
  0x5c   : > { %v331_v51 = vand.u32 4294901760, %v1945_v40  ;;  %v1989_v58 = vsub.f32 %v1888_v17, %v270_v20  ;;  %v357_v60 = vsub.f32 %v1938_v37, %v356_v52  ;;  %v370_v61 = vand.u32 4294901760, %v1964_v47  ;;  %p1629_p2 = scmp.lt.s32.totalorder %s2142_s10, %s1627_s23  ;;  %p1630_p3 = scmp.lt.s32.totalorder %s1628_s28, %s1622_s21 }
  0x5d   : > { %v377_v62 = vand.u32 4294901760, %v1966_v48  ;;  %v2001_v63 = vpack.c.bf16 %v294_v50, %v291_v49  ;;  %v344_v2 = vand.u32 4294901760, %v343_v54  ;;  %v351_v3 = vand.u32 4294901760, %v350_v55  ;;  %p1625_p11 = pneg %p1624_p10 }
  0x5e   : > { %1338 = vmatpush3.bf16.msra.mxu1 %v1892_v18  ;;  %1410 = vmatpush3.bf16.msra.mxu0 %v1892_v18  ;;  %v332_v59 = vsub.f32 %v1945_v40, %v331_v51  ;;  %v364_v4 = vsub.f32 %v1940_v38, %v363_v56  ;;  %v2007_v5 = vsub.f32 %v1898_v21, %v273_v24  ;;  %v358_v9 = vand.u32 4294901760, %v357_v60  ;;  %p1631_p5 = por %p1630_p3, %p1629_p2 }
  0x5f   : > { %1339 = vmatprep.subr.bf16.mxu1 %v1716_v0  ;;  %1411 = vmatprep.subr.bf16.mxu0 %v1716_v0  ;;  %v2010_v6 = vsub.f32 %v1900_v22, %v276_v25  ;;  %v1427_v7 = vpack.c.bf16 %v349_v46, %v342_v45  ;;  %v371_v10 = vsub.f32 %v1964_v47, %v370_v61  ;;  %v384_v16 = vand.u32 4294901760, %v1986_v57 }
  0x60   : > { %v333_v8 = vand.u32 4294901760, %v332_v59  ;;  %v378_v11 = vsub.f32 %v1966_v48, %v377_v62  ;;  %v1355_v14 = vpack.c.bf16 %v351_v3, %v344_v2  ;;  %v365_v15 = vand.u32 4294901760, %v364_v4  ;;  %p1632_p6 = pnand %p1631_p5, %p1625_p11 }
  0x61   : > { %v391_v17 = vand.u32 4294901760, %v1989_v58  ;;  %v2023_v19 = vsub.f32 %v1915_v27, %v279_v33  ;;  %v2028_v20 = vsub.f32 %v1917_v28, %v282_v34  ;;  %v1430_v21 = vpack.c.bf16 %v363_v56, %v356_v52 }
  0x62   : > { %1341 = vmatpush3.bf16.msra.mxu1 %v1907_v23  ;;  %1413 = vmatpush3.bf16.msra.mxu0 %v1907_v23  ;;  %v372_v22 = vand.u32 4294901760, %v371_v10  ;;  %v379_v24 = vand.u32 4294901760, %v378_v11  ;;  %v398_v25 = vand.u32 4294901760, %v2007_v5  ;;  %v1358_v45 = vpack.c.bf16 %v365_v15, %v358_v9 }
  0x63   : > { %1342 = vmatprep.subr.bf16.mxu1 %v1716_v0  ;;  %1414 = vmatprep.subr.bf16.mxu0 %v1716_v0  ;;  %v385_v46 = vsub.f32 %v1986_v57, %v384_v16  ;;  %v392_v27 = vsub.f32 %v1989_v58, %v391_v17  ;;  %v405_v33 = vand.u32 4294901760, %v2010_v6  ;;  %v2039_v28 = vsub.f32 %v1932_v35, %v285_v39 }
  0x64   : > { %v2044_v34 = vsub.f32 %v1936_v36, %v288_v42  ;;  %v1433_v52 = vpack.c.bf16 %v377_v62, %v370_v61  ;;  %v399_v54 = vsub.f32 %v2007_v5, %v398_v25  ;;  %v412_v55 = vand.u32 4294901760, %v2023_v19 }
  0x65   : > { %v386_v35 = vand.u32 4294901760, %v385_v46  ;;  %v393_v39 = vand.u32 4294901760, %v392_v27  ;;  %v406_v56 = vsub.f32 %v2010_v6, %v405_v33  ;;  %v419_v36 = vand.u32 4294901760, %v2028_v20 }
  0x66   : > { %1344 = vmatpush3.bf16.msra.mxu1 %v1928_v32  ;;  %1416 = vmatpush3.bf16.msra.mxu0 %v1928_v32  ;;  %v2059_v42 = vsub.f32 %v1956_v43, %v291_v49  ;;  %v2064_v59 = vsub.f32 %v1958_v44, %v294_v50  ;;  %v1436_v60 = vpack.c.bf16 %v391_v17, %v384_v16  ;;  %v400_v61 = vand.u32 4294901760, %v399_v54 }
  0x67   : > { %1345 = vmatprep.subr.bf16.mxu1 %v1716_v0  ;;  %1417 = vmatprep.subr.bf16.mxu0 %v1716_v0  ;;  %v413_v62 = vsub.f32 %v2023_v19, %v412_v55  ;;  %v426_v2 = vand.u32 4294901760, %v2039_v28  ;;  %v1364_v3 = vpack.c.bf16 %v393_v39, %v386_v35  ;;  %v407_v4 = vand.u32 4294901760, %v406_v56 }
  0x68   : > { %v433_v43 = vand.u32 4294901760, %v2044_v34  ;;  %v1439_v44 = vpack.c.bf16 %v405_v33, %v398_v25  ;;  %v1442_v15 = vpack.c.bf16 %v419_v36, %v412_v55  ;;  %v1382_v54 = vpack.c.bf16 %v1940_v38, %v1938_v37  ;;  %v230_v37 = vld [vmem:[#allocation2 + $0x2] sm:$0x3] }
  0x69   : > { %v414_v49 = vand.u32 4294901760, %v413_v62  ;;  %v427_v50 = vsub.f32 %v2039_v28, %v426_v2  ;;  %v1367_v9 = vpack.c.bf16 %v407_v4, %v400_v61 }
  0x6a   : > { %1347 = vmatpush3.bf16.msra.mxu1 %v1953_v41  ;;  %1419 = vmatpush3.bf16.msra.mxu0 %v1953_v41  ;;  %v434_v11 = vsub.f32 %v2044_v34, %v433_v43 }
  0x6b   : > { %1348 = vmatprep.subr.bf16.mxu1 %v1716_v0  ;;  %1420 = vmatprep.subr.bf16.mxu0 %v1716_v0  ;;  %v428_v16 = vand.u32 4294901760, %v427_v50 }
  0x6e   : > { %1350 = vmatpush3.bf16.msra.mxu1 %v1978_v53  ;;  %1422 = vmatpush3.bf16.msra.mxu0 %v1978_v53 }
  0x6f   : > { %1351 = vmatprep.subr.bf16.mxu1 %v1716_v0  ;;  %1423 = vmatprep.subr.bf16.mxu0 %v1716_v0 }
  0x72   : > { %1353 = vmatpush3.bf16.msra.mxu1 %v2001_v63  ;;  %1425 = vmatpush3.bf16.msra.mxu0 %v2001_v63 }
  0x73   : > { %1354 = vmatprep.subr.bf16.mxu1 %v1716_v0  ;;  %1426 = vmatprep.subr.bf16.mxu0 %v1716_v0 }
  0x75   : > { %1153 = vmatmul.mubr.f32.vlgmr.msra.gmra.mrb[0].mxu1 %v333_v8  ;;  %1258 = vmatmul.mubr.f32.vlgmr.msra.gmra.mrb[0].mxu0 %v331_v51  ;;  %v1361_v51 = vpack.c.bf16 %v379_v24, %v372_v22  ;;  %v440_v8 = vand.u32 4294901760, %v2059_v42 }
  0x76   : > { %1356 = vmatpush3.bf16.msra.mxu1 %v1355_v14  ;;  %1428 = vmatpush3.bf16.msra.mxu0 %v1427_v7  ;;  %v420_v7 = vsub.f32 %v2028_v20, %v419_v36  ;;  %v447_v14 = vand.u32 4294901760, %v2064_v59 }
  0x77   : > { %1357 = vmatprep.subr.bf16.mxu1 %v1716_v0  ;;  %1429 = vmatprep.subr.bf16.mxu0 %v1716_v0  ;;  %v441_v22 = vsub.f32 %v2059_v42, %v440_v8 }
  0x78   : > { %1187 = vmatprep.mubr.msk.f32.mxu1 %vm1717_vm0, %v1718_v1  ;;  %1292 = vmatprep.mubr.msk.f32.mxu0 %vm1717_vm0, %v1718_v1  ;;  %v421_v10 = vand.u32 4294901760, %v420_v7  ;;  %v448_v24 = vsub.f32 %v2064_v59, %v447_v14 }
  0x79   : > { %v442_v46 = vand.u32 4294901760, %v441_v22 }
  0x7a   : > { %1359 = vmatpush3.bf16.msra.mxu1 %v1358_v45  ;;  %1431 = vmatpush3.bf16.msra.mxu0 %v1430_v21  ;;  %v1370_v17 = vpack.c.bf16 %v421_v10, %v414_v49  ;;  %v435_v21 = vand.u32 4294901760, %v434_v11  ;;  %v1445_v45 = vpack.c.bf16 %v433_v43, %v426_v2  ;;  %v449_v27 = vand.u32 4294901760, %v448_v24 }
  0x7b   : > { %1360 = vmatprep.subr.bf16.mxu1 %v1716_v0  ;;  %1432 = vmatprep.subr.bf16.mxu0 %v1716_v0 }
  0x7c   : > { %v1373_v25 = vpack.c.bf16 %v435_v21, %v428_v16  ;;  %v1376_v33 = vpack.c.bf16 %v449_v27, %v442_v46 }
  0x7e   : > { %1362 = vmatpush3.bf16.msra.mxu1 %v1361_v51  ;;  %1434 = vmatpush3.bf16.msra.mxu0 %v1433_v52  ;;  %v1448_v51 = vpack.c.bf16 %v447_v14, %v440_v8  ;;  %v1379_v52 = vpack.c.bf16 %v1924_v31, %v1919_v29  ;;  %v1385_v29 = vpack.c.bf16 %v1966_v48, %v1964_v47  ;;  %v228_v31 = vld [vmem:[#allocation2] sm:$0x3] }
  0x7f   : > { %1363 = vmatprep.subr.bf16.mxu1 %v1716_v0  ;;  %1435 = vmatprep.subr.bf16.mxu0 %v1716_v0  ;;  %v889_v47 = vmul.f32 %v1911_v26, %v228_v31 }
  0x82   : > { %1365 = vmatpush3.bf16.msra.mxu1 %v1364_v3  ;;  %1437 = vmatpush3.bf16.msra.mxu0 %v1436_v60 }
  0x83   : > { %1366 = vmatprep.subr.bf16.mxu1 %v1716_v0  ;;  %1438 = vmatprep.subr.bf16.mxu0 %v1716_v0 }
  0x86   : > { %1368 = vmatpush3.bf16.msra.mxu1 %v1367_v9  ;;  %1440 = vmatpush3.bf16.msra.mxu0 %v1439_v44 }
  0x87   : > { %1369 = vmatprep.subr.bf16.mxu1 %v1716_v0  ;;  %1441 = vmatprep.subr.bf16.mxu0 %v1716_v0 }
  0x8a   : > { %1371 = vmatpush3.bf16.msra.mxu1 %v1370_v17  ;;  %1443 = vmatpush3.bf16.msra.mxu0 %v1442_v15 }
  0x8b   : > { %1372 = vmatprep.subr.bf16.mxu1 %v1716_v0  ;;  %1444 = vmatprep.subr.bf16.mxu0 %v1716_v0 }
  0x8e   : > { %1374 = vmatpush3.bf16.msra.mxu1 %v1373_v25  ;;  %1446 = vmatpush3.bf16.msra.mxu0 %v1445_v45 }
  0x8f   : > { %1375 = vmatprep.subr.bf16.mxu1 %v1716_v0  ;;  %1447 = vmatprep.subr.bf16.mxu0 %v1716_v0 }
  0x92   : > { %1377 = vmatpush3.bf16.msra.mxu1 %v1376_v33  ;;  %1449 = vmatpush3.bf16.msra.mxu0 %v1448_v51 }
  0x93   : > { %1378 = vmatprep.subr.bf16.mxu1 %v1716_v0  ;;  %1450 = vmatprep.subr.bf16.mxu0 %v1716_v0 }
  0x95   : > { %1188 = vmatmul.mubr.f32.vlgmr.msra.gmra.mrb[0].mxu1 %v1922_v30  ;;  %1293 = vmatmul.mubr.f32.vlgmr.msra.gmra.mrb[0].mxu0 %v1922_v30 }
  0x96   : > { %1380 = vmatpush3.bf16.msra.mxu1 %v1379_v52  ;;  %1452 = vmatpush3.bf16.msra.mxu0 %v1877_v12  ;;  %v1388_v12 = vpack.c.bf16 %v1989_v58, %v1986_v57 }
  0x97   : > { %1381 = vmatprep.subr.bf16.mxu1 %v1716_v0  ;;  %1453 = vmatprep.subr.bf16.mxu0 %v1716_v0 }
  0x98   : > { %1222 = vmatprep.mubr.msk.f32.mxu1 %vm1717_vm0, %v1718_v1  ;;  %1327 = vmatprep.mubr.msk.f32.mxu0 %vm1717_vm0, %v1718_v1  ;;  %v1391_v1 = vpack.c.bf16 %v2010_v6, %v2007_v5 }
  0x9a   : > { %1383 = vmatpush3.bf16.msra.mxu1 %v1382_v54  ;;  %1455 = vmatpush3.bf16.msra.mxu0 %v1882_v13  ;;  %v1394_v13 = vpack.c.bf16 %v2028_v20, %v2023_v19 }
  0x9b   : > { %1384 = vmatprep.subr.bf16.mxu1 %v1716_v0  ;;  %1456 = vmatprep.subr.bf16.mxu0 %v1716_v0 }
  0x9e   : > { %1386 = vmatpush3.bf16.msra.mxu1 %v1385_v29  ;;  %1458 = vmatpush3.bf16.msra.mxu0 %v1892_v18  ;;  %v1397_v18 = vpack.c.bf16 %v2044_v34, %v2039_v28 }
  0x9f   : > { %1387 = vmatprep.subr.bf16.mxu1 %v1716_v0  ;;  %1459 = vmatprep.subr.bf16.mxu0 %v1716_v0 }
  0xa2   : > { %1389 = vmatpush3.bf16.msra.mxu1 %v1388_v12  ;;  %1461 = vmatpush3.bf16.msra.mxu0 %v1907_v23  ;;  %v1400_v23 = vpack.c.bf16 %v2064_v59, %v2059_v42 }
  0xa3   : > { %1390 = vmatprep.subr.bf16.mxu1 %v1716_v0  ;;  %1462 = vmatprep.subr.bf16.mxu0 %v1716_v0 }
  0xa6   : > { %1392 = vmatpush3.bf16.msra.mxu1 %v1391_v1  ;;  %1464 = vmatpush3.bf16.msra.mxu0 %v1928_v32 }
  0xa7   : > { %1393 = vmatprep.subr.bf16.mxu1 %v1716_v0  ;;  %1465 = vmatprep.subr.bf16.mxu0 %v1716_v0 }
  0xaa   : > { %1395 = vmatpush3.bf16.msra.mxu1 %v1394_v13  ;;  %1467 = vmatpush3.bf16.msra.mxu0 %v1953_v41 }
  0xab   : > { %1396 = vmatprep.subr.bf16.mxu1 %v1716_v0  ;;  %1468 = vmatprep.subr.bf16.mxu0 %v1716_v0 }
  0xae   : > { %1398 = vmatpush3.bf16.msra.mxu1 %v1397_v18  ;;  %1470 = vmatpush3.bf16.msra.mxu0 %v1978_v53 }
  0xaf   : > { %1399 = vmatprep.subr.bf16.mxu1 %v1716_v0  ;;  %1471 = vmatprep.subr.bf16.mxu0 %v1716_v0 }
  0xb2   : > { %1401 = vmatpush3.bf16.msra.mxu1 %v1400_v23  ;;  %1473 = vmatpush3.bf16.msra.mxu0 %v2001_v63 }
  0xb5   : > { %1223 = vmatmul.mubr.f32.vlgmr.msra.gmra.mrb[0].mxu1 %v1945_v40  ;;  %1328 = vmatmul.mubr.f32.vlgmr.msra.gmra.mrb[0].mxu0 %v1922_v30 }
 0x188   : > { %v590_v32 = vpop.f32.mrb[0].mxu1  ;;  %v885_v38 = vpop.f32.mrb[0].mxu0 }
 0x189   : > { %v1474_v41 = vadd.f32 %v885_v38, %v590_v32  ;;  %v1224_v48 = vpop.f32.mrb[1].mxu1  ;;  %v1329_v53 = vpop.f32.mrb[1].mxu0 }
 0x18b   : > { %v890_v0 = vmul.f32 %v1474_v41, %v230_v37 }
 0x18d   : > { %v891_v57 = vadd.f32 %v890_v0, %v889_v47 }
 0x18f   : > { %892 = vst [vmem:[%s220_s9] sm:$0x3] %v891_v57 }
 0x190   : > { %1635 = shalt.err (!%p1632_p6)
}
 0x191   : > { %s1636_s26 = scalar_lea.hbm %s2140_s29, 32  ;;  %s1640_s5 = scalar_lea.hbm %s2190_s3, 64 }
 0x192   : > { %p1637_p7 = scmp.ne.s32.totalorder %s2140_s29, %s1636_s26  ;;  %p1641_p0 = scmp.lt.u32.totalorder %s2140_s29, %s2190_s3 }
 0x193   : > { %p1642_p1 = scmp.lt.u32.totalorder %s1640_s5, %s1636_s26  ;;  %p1644_p4 = scmp.lt.u32.totalorder %s1636_s26, %s2140_s29 }
 0x194   : > { %p1638_p9 = pnand %p1637_p7, %p2202_p8 }
 0x195   : > { %p1643_p13 = por %p1642_p1, %p1641_p0 }
 0x196   : > { %p1639_p12 = pneg %p1638_p9 }
 0x197   : > { %p1645_p10 = por %p1644_p4, %p1643_p13 }
 0x199   : > { %p1646_p11 = pnand %p1645_p10, %p1639_p12 }
 0x19b   : > { %1649 = shalt.err (!%p1646_p11)
}
 0x19c   : > { %1491 = dma.vmem_to_hbm [thread:$0]  (%p2202_p8), %s2142_s10, 32, %s2140_s29, %s894_s19  }
 0x19d PF: > { %p1508_p2 = scmp.ge.s32.totalorder %s1708_s17, 2  ;;  %s920_s7 = sand.u32 1, %s1688_s12  }
 0x19e   : > { %p2203_p3 = scmp.ne.s32.totalorder %s2196_s24, 0  ;;  %s921_s8 = scalar_lea.sflag [#allocation4], %s920_s7 }
 0x1a0   : > { %p1501_p5 = pnand %p1508_p2, %p2203_p3 }
 0x1a2   : > { %1683 = dma.done.wait (!%p1501_p5), %s921_s8, 32  }
 0x1a3   : > { %1685 = vsyncadd (!%p1501_p5), %s921_s8, 4294967264  ;;  %s18_s17 = sadd.s32 1, %s1708_s17   ;;  %s2204_s12 = smov %s1692_s13 }
 0x1a4   : > { %p15_p6 = scmp.ge.s32.totalorder %s18_s17, 4   ;;  %s2205_s13 = smov %s1696_s14 }
 0x1a5   : > { %s2206_s14 = smov %s1793_s25  ;;  %s2207_s15 = smov %s1704_s16 }
 0x1a6   : > { %s2208_s16 = smov %s2210_s20  ;;  %17 = sbr.rel (!%p15_p6) target bundleno = 6 (0x6), region = 78 }
 0x1ad   :  { %926 = vsyncpa [#allocation3], 1 }
 0x1ae   :  { %928 = vsyncpa [#allocation3 + $0x1], 1 }
 0x1af   :  { %929 = vsyncpa [#allocation6], 1 }
 0x1b0   :  { %930 = vsyncpa [#allocation4], 1 }
 0x1b1   :  { %932 = vsyncpa [#allocation4 + $0x1], 1 }

</bundles_post_ra>
